<compile_context>
chip_gen: v7x
topology: tpu7x:2x2x1
jax: 0.10.0
libtpu: 0.0.40
codegen_flags: <defaults>
</compile_context>

<pallas_src>
import functools

import jax
import jax.numpy as jnp
from jax.experimental import pallas as pl
from jax.experimental.pallas import tpu as pltpu


def _round_up(x, m):
    return ((x + m - 1) // m) * m


def _block_vmem_bytes(shape, itemsize):
    """Conservative VMEM footprint of a 2-D block (sublane/lane padded)."""
    r, c = shape
    return _round_up(r, 8) * _round_up(c, 128) * itemsize


def _pick_instance_tile(n, d_pad, weight_bytes, budget_bytes, feat_buffers):
    """Largest Nt whose (feat_buffers x Nt x Dp bf16) buffers + weights fit the budget."""
    misc = 2 << 20                                     # out blocks, scratch, slack
    avail = max(budget_bytes - weight_bytes - misc, 1 << 20)
    per_row = feat_buffers * d_pad * 2                 # bf16 feature rows, all buffers
    nt = avail // per_row
    nt = min(nt, 4096)                                 # diminishing returns past this
    nt = min(nt, _round_up(n, 8))                      # never bigger than the slide
    if nt >= 128:
        nt = (nt // 128) * 128
    else:
        nt = max((nt // 8) * 8, 8)
    return int(nt)


def _abmil_kernel(
    feat_ref,        # (1, Nt, Dp)   bf16  feature tile (one batch row, one N tile)
    wvu_ref,         # (Dp, 2*Hdp)   bf16  fused [V | U] attention projection
    bvu_ref,         # (1, 2*Hdp)    f32
    wa_ref,          # (1, Hdp)      bf16  attention scorer (row layout)
    ba_ref,          # (1, 1)        f32
    wc1_ref,         # (Dp, Hcp)     bf16  classifier layer 1
    bc1_ref,         # (1, Hcp)      f32
    wc2_ref,         # (Hcp, 128)    bf16  classifier layer 2 (column 0 real)
    bc2_ref,         # (1, 128)      f32   (column 0 real)
    out_ref,         # (1, 1, 128)   f32   lane-dense logit tile
    m_sc,            # (1, 1)  f32   running max (online softmax)
    l_sc,            # (1, 1)  f32   running denominator
    acc_sc,          # (1, Dp) f32   running unnormalized pooled embedding
    *,
    hdp,             # padded head dim (static)
    n_valid,         # true number of instances (static)
    n_tile,          # Nt (static)
):
    n = pl.program_id(1)
    n_last = pl.num_programs(1) - 1

    @pl.when(n == 0)
    def _():
        m_sc[...] = jnp.full(m_sc.shape, -jnp.inf, jnp.float32)
        l_sc[...] = jnp.zeros(l_sc.shape, jnp.float32)
        acc_sc[...] = jnp.zeros(acc_sc.shape, jnp.float32)

    h = feat_ref[0]                                               # (Nt, Dp) bf16

    # --- fused gated-attention projection: one MXU pass for both branches ---
    vu = jnp.dot(h, wvu_ref[...],
                 preferred_element_type=jnp.float32) + bvu_ref[...]     # (Nt, 2*Hdp)
    g = jnp.tanh(vu[:, :hdp]) * jax.nn.sigmoid(vu[:, hdp:])             # (Nt, Hdp) f32

    # --- attention scores along the lane axis (bf16 operands, f32 accumulation) ---
    s = jax.lax.dot_general(
        wa_ref[...], g.astype(jnp.bfloat16), (((1,), (1,)), ((), ())),
        preferred_element_type=jnp.float32) + ba_ref[...]               # (1, Nt)

    # mask padded instances; the (n < n_last) term neutralizes the mask on every
    # tile except the last one (only the last tile can contain padding rows).
    if n_valid % n_tile != 0:
        col = jax.lax.broadcasted_iota(jnp.int32, s.shape, 1) + n * n_tile
        s = jnp.where((col < n_valid) | (n < n_last), s, -jnp.inf)

    # --- online softmax over instances ---
    m_prev = m_sc[...]
    m_new = jnp.maximum(m_prev, jnp.max(s, axis=-1, keepdims=True))     # (1, 1)
    alpha = jnp.exp(m_prev - m_new)
    p = jnp.exp(s - m_new)                                              # (1, Nt)
    l_sc[...] = alpha * l_sc[...] + jnp.sum(p, axis=-1, keepdims=True)
    # attention-weighted pooling as a (1,Nt)@(Nt,Dp) matmul on the MXU.
    acc_sc[...] = alpha * acc_sc[...] + jnp.dot(
        p.astype(jnp.bfloat16), h, preferred_element_type=jnp.float32)  # (1, Dp)
    m_sc[...] = m_new

    # --- finalize: normalize, classifier head, lane-dense store ---
    @pl.when(n == n_last)
    def _():
        z = acc_sc[...] / l_sc[...]                                     # (1, Dp) f32
        hid = jnp.maximum(
            jnp.dot(z.astype(jnp.bfloat16), wc1_ref[...],
                    preferred_element_type=jnp.float32) + bc1_ref[...], 0.0)
        logits = jnp.dot(hid.astype(jnp.bfloat16), wc2_ref[...],
                         preferred_element_type=jnp.float32) + bc2_ref[...]
        out_ref[0] = logits                                             # (1, 128)


def binary_classification_forward(features, params, *, instance_tile=None,
                                  feat_buffers=3):
    """features: (B, N, D) float32 -> logits: (B,) float32.

    instance_tile (Nt): per-grid-step instance block.  None -> derived from the
    current generation's VMEM capacity (largest tile that fits the budget).
    """
    B, N, D = features.shape
    hd = params["wv"].shape[1]
    hc = params["wc1"].shape[1]

    # --- padded / fused parameter layout (lane-dense: multiples of 128) ---
    d_pad = max(_round_up(D, 128), 128)
    hdp = max(_round_up(hd, 128), 128)
    hcp = max(_round_up(hc, 128), 128)

    def pad2(x, rows, cols):
        return jnp.pad(x, ((0, rows - x.shape[0]), (0, cols - x.shape[1])))

    w_vu = jnp.concatenate(
        [pad2(params["wv"], d_pad, hdp), pad2(params["wu"], d_pad, hdp)],
        axis=1).astype(jnp.bfloat16)                                    # (Dp, 2*hdp)
    b_vu = jnp.concatenate(
        [pad2(params["bv"], 1, hdp), pad2(params["bu"], 1, hdp)],
        axis=1).astype(jnp.float32)                                     # (1, 2*hdp)
    wa_row = pad2(params["wa"].T, 1, hdp).astype(jnp.bfloat16)          # (1, hdp)
    ba = params["ba"].astype(jnp.float32)                               # (1, 1)
    wc1 = pad2(params["wc1"], d_pad, hcp).astype(jnp.bfloat16)          # (Dp, hcp)
    bc1 = pad2(params["bc1"], 1, hcp).astype(jnp.float32)               # (1, hcp)
    wc2 = pad2(params["wc2"], hcp, 128).astype(jnp.bfloat16)            # (hcp, 128)
    bc2 = pad2(params["bc2"], 1, 128).astype(jnp.float32)               # (1, 128)

    # --- VMEM budget (per generation: v5e/v6e 128 MiB, v7x 64 MiB per TC) ---
    try:
        vmem_cap = int(pltpu.get_tpu_info().vmem_capacity_bytes)
    except Exception:
        vmem_cap = 64 << 20
    pipeline_budget = (vmem_cap * 5) // 8        # features + weights target
    vmem_limit = (vmem_cap * 3) // 4             # leave headroom for compiler scratch

    weight_bytes = (
        _block_vmem_bytes(w_vu.shape, 2) + _block_vmem_bytes(b_vu.shape, 4)
        + _block_vmem_bytes(wa_row.shape, 2) + _block_vmem_bytes(ba.shape, 4)
        + _block_vmem_bytes(wc1.shape, 2) + _block_vmem_bytes(bc1.shape, 4)
        + _block_vmem_bytes(wc2.shape, 2) + _block_vmem_bytes(bc2.shape, 4))

    if instance_tile is None:
        nt = _pick_instance_tile(N, d_pad, weight_bytes, pipeline_budget,
                                 feat_buffers)
    else:
        nt = max(_round_up(int(instance_tile), 8), 8)

    # --- N / D padding (online softmax over instance tiles, lane-dense D) ---
    n_pad = _round_up(N, nt)
    feats = features
    if n_pad != N or d_pad != D:
        feats = jnp.pad(feats, ((0, 0), (0, n_pad - N), (0, d_pad - D)))
    feats = feats.astype(jnp.bfloat16)
    n_blocks = n_pad // nt

    kernel = functools.partial(_abmil_kernel, hdp=hdp, n_valid=N, n_tile=nt)

    def run(use_pipeline_modes):
        def spec(shape, imap, mode):
            if use_pipeline_modes and mode is not None:
                return pl.BlockSpec(shape, imap, pipeline_mode=mode)
            return pl.BlockSpec(shape, imap)

        wmode = pl.Buffered(1) if use_pipeline_modes else None       # weights: single buf
        fmode = pl.Buffered(feat_buffers) if use_pipeline_modes else None

        return pl.pallas_call(
            kernel,
            out_shape=jax.ShapeDtypeStruct((B, 1, 128), jnp.float32),
            grid=(B, n_blocks),
            in_specs=[
                spec((1, nt, d_pad), lambda b, n: (b, n, 0), fmode),
                # Weights: constant index maps -> VMEM-resident, DMA'd once.
                spec((d_pad, 2 * hdp), lambda b, n: (0, 0), wmode),
                spec((1, 2 * hdp), lambda b, n: (0, 0), wmode),
                spec((1, hdp), lambda b, n: (0, 0), wmode),
                spec((1, 1), lambda b, n: (0, 0), wmode),
                spec((d_pad, hcp), lambda b, n: (0, 0), wmode),
                spec((1, hcp), lambda b, n: (0, 0), wmode),
                spec((hcp, 128), lambda b, n: (0, 0), wmode),
                spec((1, 128), lambda b, n: (0, 0), wmode),
            ],
            out_specs=pl.BlockSpec((1, 1, 128), lambda b, n: (b, 0, 0)),
            scratch_shapes=[
                pltpu.VMEM((1, 1), jnp.float32),      # running max
                pltpu.VMEM((1, 1), jnp.float32),      # running denominator
                pltpu.VMEM((1, d_pad), jnp.float32),  # running pooled embedding
            ],
            compiler_params=pltpu.CompilerParams(
                dimension_semantics=("parallel", "arbitrary"),
                vmem_limit_bytes=int(vmem_limit)),
        )(feats, w_vu, b_vu, wa_row, ba, wc1, bc1, wc2, bc2)

    try:
        out = run(True)
    except Exception:
        # Fallback: drop pipeline_mode/Buffered (older jax) and use default buffering.
        out = run(False)

    return out[:, 0, 0]   # == classifier(...).squeeze(1)


def reference_forward(features, params):
    """Pure-JAX f32 reference of the same forward pass."""
    h = features.astype(jnp.float32)
    v = jnp.tanh(jnp.einsum("bnd,dk->bnk", h, params["wv"]) + params["bv"])
    u = jax.nn.sigmoid(jnp.einsum("bnd,dk->bnk", h, params["wu"]) + params["bu"])
    s = jnp.einsum("bnk,ko->bno", v * u, params["wa"]) + params["ba"]     # (B, N, 1)
    attn = jax.nn.softmax(s[..., 0], axis=-1)                              # (B, N)
    z = jnp.einsum("bn,bnd->bd", attn, h)                                  # (B, D)
    hid = jnp.maximum(z @ params["wc1"] + params["bc1"], 0.0)
    return (hid @ params["wc2"] + params["bc2"])[:, 0]


def init_params(key, input_feature_dim, head_dim, hidden_dim):
    ks = jax.random.split(key, 10)
    f32 = jnp.float32

    def w(k, shape):
        return jax.random.normal(k, shape, dtype=f32) * 0.05

    return {
        "wv": w(ks[0], (input_feature_dim, head_dim)),
        "bv": w(ks[1], (1, head_dim)),
        "wu": w(ks[2], (input_feature_dim, head_dim)),
        "bu": w(ks[3], (1, head_dim)),
        "wa": w(ks[4], (head_dim, 1)),
        "ba": w(ks[5], (1, 1)),
        "wc1": w(ks[6], (input_feature_dim, hidden_dim)),
        "bc1": w(ks[7], (1, hidden_dim)),
        "wc2": w(ks[8], (hidden_dim, 1)),
        "bc2": w(ks[9], (1, 1)),
    }


if __name__ == "__main__":
    # Small shapes consistent with the module's forward:
    #   batch["features"]: (B, N, input_feature_dim)
    B, N, D = 2, 40, 32          # input_feature_dim = 32
    HEAD_DIM, HIDDEN_DIM = 16, 16

    key = jax.random.PRNGKey(0)
    k_feat, k_params = jax.random.split(key)
    features = jax.random.normal(k_feat, (B, N, D), dtype=jnp.float32)
    params = init_params(k_params, D, HEAD_DIM, HIDDEN_DIM)

    ref = reference_forward(features, params)

    # Path 1: explicit small tile -> exercises multiple N tiles + last-tile masking.
    logits_tiled = jax.block_until_ready(
        binary_classification_forward(features, params, instance_tile=16))
    # Path 2: auto (VMEM-budget-derived) tile -> single tile covering all instances.
    logits_auto = jax.block_until_ready(
        binary_classification_forward(features, params))

    assert logits_tiled.shape == (B,), logits_tiled.shape
    assert logits_auto.shape == (B,), logits_auto.shape
    # bf16 feature/weight quantization inside the kernel -> loose-ish tolerance.
    assert jnp.allclose(logits_tiled, ref, atol=2e-2, rtol=2e-2), (logits_tiled, ref)
    assert jnp.allclose(logits_auto, ref, atol=2e-2, rtol=2e-2), (logits_auto, ref)

    print("KERNEL_OK")
</pallas_src>

<mosaic_0001>
module attributes {stable_mosaic.version = 11 : i64} {
  func.func @_abmil_kernel(%arg0: i32, %arg1: i32, %arg2: memref<1x16x128xbf16, #tpu.memory_space<vmem>>, %arg3: memref<128x256xbf16, #tpu.memory_space<vmem>>, %arg4: memref<1x256xf32, #tpu.memory_space<vmem>>, %arg5: memref<1x128xbf16, #tpu.memory_space<vmem>>, %arg6: memref<1x1xf32, #tpu.memory_space<vmem>>, %arg7: memref<128x128xbf16, #tpu.memory_space<vmem>>, %arg8: memref<1x128xf32, #tpu.memory_space<vmem>>, %arg9: memref<128x128xbf16, #tpu.memory_space<vmem>>, %arg10: memref<1x128xf32, #tpu.memory_space<vmem>>, %arg11: memref<1x1x128xf32, #tpu.memory_space<vmem>>, %arg12: memref<1x1xf32, #tpu.memory_space<vmem>>, %arg13: memref<1x1xf32, #tpu.memory_space<vmem>>, %arg14: memref<1x128xf32, #tpu.memory_space<vmem>>) attributes {dimension_semantics = [#tpu.dimension_semantics<parallel>, #tpu.dimension_semantics<arbitrary>], iteration_bounds = array<i64: 2, 3>, scalar_prefetch = 0 : i64, scratch_operands = 3 : i64, tpu.core_type = #tpu.core_type<tc>, window_params = [{transform_indices = @transform_0, window_bounds = array<i64: 1, 16, 128>}, {pipeline_mode = #tpu.pipeline_mode<synchronous>, transform_indices = @transform_1, window_bounds = array<i64: 128, 256>}, {pipeline_mode = #tpu.pipeline_mode<synchronous>, transform_indices = @transform_2, window_bounds = array<i64: 1, 256>}, {pipeline_mode = #tpu.pipeline_mode<synchronous>, transform_indices = @transform_3, window_bounds = array<i64: 1, 128>}, {pipeline_mode = #tpu.pipeline_mode<synchronous>, transform_indices = @transform_4, window_bounds = array<i64: 1, 1>}, {pipeline_mode = #tpu.pipeline_mode<synchronous>, transform_indices = @transform_5, window_bounds = array<i64: 128, 128>}, {pipeline_mode = #tpu.pipeline_mode<synchronous>, transform_indices = @transform_6, window_bounds = array<i64: 1, 128>}, {pipeline_mode = #tpu.pipeline_mode<synchronous>, transform_indices = @transform_7, window_bounds = array<i64: 128, 128>}, {pipeline_mode = #tpu.pipeline_mode<synchronous>, transform_indices = @transform_8, window_bounds = array<i64: 1, 128>}, {transform_indices = @transform_9, window_bounds = array<i64: 1, 1, 128>}]} {
    %c0_i32 = arith.constant 0 : i32
    %0 = arith.cmpi eq, %arg1, %c0_i32 : i32
    %1 = arith.extui %0 : i1 to i32
    %c0_i32_0 = arith.constant 0 : i32
    %2 = arith.cmpi ne, %1, %c0_i32_0 : i32
    scf.if %2 {
      %cst_31 = arith.constant 0xFF800000 : f32
      %62 = vector.broadcast %cst_31 : f32 to vector<1x1xf32>
      %c0_32 = arith.constant 0 : index
      %c0_33 = arith.constant 0 : index
      %63 = vector.load %arg12[%c0_32, %c0_33] : memref<1x1xf32, #tpu.memory_space<vmem>>, vector<1x1xf32>
      tpu.vector_store %arg12[%c0_32, %c0_33], %62 {strides = array<i32>} : memref<1x1xf32, #tpu.memory_space<vmem>>, vector<1x1xf32>,
      %cst_34 = arith.constant 0.000000e+00 : f32
      %64 = vector.broadcast %cst_34 : f32 to vector<1x1xf32>
      %c0_35 = arith.constant 0 : index
      %c0_36 = arith.constant 0 : index
      %65 = vector.load %arg13[%c0_35, %c0_36] : memref<1x1xf32, #tpu.memory_space<vmem>>, vector<1x1xf32>
      tpu.vector_store %arg13[%c0_35, %c0_36], %64 {strides = array<i32>} : memref<1x1xf32, #tpu.memory_space<vmem>>, vector<1x1xf32>,
      %cst_37 = arith.constant 0.000000e+00 : f32
      %66 = vector.broadcast %cst_37 : f32 to vector<1x128xf32>
      %c0_38 = arith.constant 0 : index
      %c0_39 = arith.constant 0 : index
      %67 = vector.load %arg14[%c0_38, %c0_39] : memref<1x128xf32, #tpu.memory_space<vmem>>, vector<1x128xf32>
      tpu.vector_store %arg14[%c0_38, %c0_39], %66 {strides = array<i32>} : memref<1x128xf32, #tpu.memory_space<vmem>>, vector<1x128xf32>,
    } else {
    }
    %c0 = arith.constant 0 : index
    %c0_1 = arith.constant 0 : index
    %c0_2 = arith.constant 0 : index
    %3 = vector.load %arg2[%c0, %c0_1, %c0_2] : memref<1x16x128xbf16, #tpu.memory_space<vmem>>, vector<1x16x128xbf16>
    %4 = vector.shape_cast %3 : vector<1x16x128xbf16> to vector<16x128xbf16>
    %c0_3 = arith.constant 0 : index
    %c0_4 = arith.constant 0 : index
    %5 = vector.load %arg3[%c0_3, %c0_4] : memref<128x256xbf16, #tpu.memory_space<vmem>>, vector<128x256xbf16>
    %cst = arith.constant dense<0.000000e+00> : vector<16x256xf32>
    %6 = tpu.matmul %4, %5, %cst {dimension_numbers = #tpu.dot_dimension_numbers<[1], [0], [0], [1], [0, 0, 1, 1], [], []>} : vector<16x128xbf16>, vector<128x256xbf16>, vector<16x256xf32> -> vector<16x256xf32>
    %c0_5 = arith.constant 0 : index
    %c0_6 = arith.constant 0 : index
    %7 = vector.load %arg4[%c0_5, %c0_6] : memref<1x256xf32, #tpu.memory_space<vmem>>, vector<1x256xf32>
    %8 = vector.broadcast %7 : vector<1x256xf32> to vector<16x256xf32>
    %9 = arith.addf %6, %8 : vector<16x256xf32>
    %10 = vector.extract_strided_slice %9 {offsets = [0, 0], sizes = [16, 128], strides = [1, 1]} : vector<16x256xf32> to vector<16x128xf32>
    %11 = math.tanh %10 : vector<16x128xf32>
    %12 = vector.extract_strided_slice %9 {offsets = [0, 128], sizes = [16, 128], strides = [1, 1]} : vector<16x256xf32> to vector<16x128xf32>
    %13 = arith.negf %12 : vector<16x128xf32>
    %14 = math.exp %13 : vector<16x128xf32>
    %cst_7 = arith.constant 1.000000e+00 : f32
    %15 = vector.broadcast %cst_7 : f32 to vector<16x128xf32>
    %16 = arith.addf %15, %14 : vector<16x128xf32>
    %17 = arith.divf %15, %16 : vector<16x128xf32>
    %18 = arith.mulf %11, %17 : vector<16x128xf32>
    %c0_8 = arith.constant 0 : index
    %c0_9 = arith.constant 0 : index
    %19 = vector.load %arg5[%c0_8, %c0_9] : memref<1x128xbf16, #tpu.memory_space<vmem>>, vector<1x128xbf16>
    %20 = arith.truncf %18 : vector<16x128xf32> to vector<16x128xbf16>
    %cst_10 = arith.constant dense<0.000000e+00> : vector<1x16xf32>
    %21 = tpu.matmul %19, %20, %cst_10 {dimension_numbers = #tpu.dot_dimension_numbers<[1], [1], [0], [0], [0, 0, 1, 0], [], []>} : vector<1x128xbf16>, vector<16x128xbf16>, vector<1x16xf32> -> vector<1x16xf32>
    %c0_11 = arith.constant 0 : index
    %c0_12 = arith.constant 0 : index
    %22 = vector.load %arg6[%c0_11, %c0_12] : memref<1x1xf32, #tpu.memory_space<vmem>>, vector<1x1xf32>
    %23 = vector.broadcast %22 : vector<1x1xf32> to vector<1x16xf32>
    %24 = arith.addf %21, %23 : vector<1x16xf32>
    %25 = tpu.iota {dimensions = array<i32: 1>} : vector<1x16xi32>
    %c16_i32 = arith.constant 16 : i32
    %26 = arith.muli %arg1, %c16_i32 : i32
    %27 = vector.broadcast %26 : i32 to vector<1x16xi32>
    %28 = arith.addi %25, %27 : vector<1x16xi32>
    %c40_i32 = arith.constant 40 : i32
    %29 = vector.broadcast %c40_i32 : i32 to vector<1x16xi32>
    %30 = arith.cmpi slt, %28, %29 : vector<1x16xi32>
    %c2_i32 = arith.constant 2 : i32
    %31 = arith.cmpi slt, %arg1, %c2_i32 : i32
    %32 = vector.broadcast %31 : i1 to vector<1x16xi1>
    %33 = arith.ori %30, %32 : vector<1x16xi1>
    %cst_13 = arith.constant 0xFF800000 : f32
    %34 = vector.broadcast %cst_13 : f32 to vector<1x16xf32>
    %35 = arith.select %33, %24, %34 : vector<1x16xi1>, vector<1x16xf32>
    %c0_14 = arith.constant 0 : index
    %c0_15 = arith.constant 0 : index
    %36 = vector.load %arg12[%c0_14, %c0_15] : memref<1x1xf32, #tpu.memory_space<vmem>>, vector<1x1xf32>
    %cst_16 = arith.constant dense<0xFF800000> : vector<1xf32>
    %37 = vector.multi_reduction <maximumf>, %35, %cst_16 [1] : vector<1x16xf32> to vector<1xf32>
    %38 = vector.shape_cast %37 : vector<1xf32> to vector<1x1xf32>
    %39 = arith.maximumf %36, %38 : vector<1x1xf32>
    %40 = arith.subf %36, %39 : vector<1x1xf32>
    %41 = math.exp %40 : vector<1x1xf32>
    %42 = vector.broadcast %39 : vector<1x1xf32> to vector<1x16xf32>
    %43 = arith.subf %35, %42 : vector<1x16xf32>
    %44 = math.exp %43 : vector<1x16xf32>
    %c0_17 = arith.constant 0 : index
    %c0_18 = arith.constant 0 : index
    %45 = vector.load %arg13[%c0_17, %c0_18] : memref<1x1xf32, #tpu.memory_space<vmem>>, vector<1x1xf32>
    %46 = arith.mulf %41, %45 : vector<1x1xf32>
    %cst_19 = arith.constant dense<0.000000e+00> : vector<1xf32>
    %47 = vector.multi_reduction <add>, %44, %cst_19 [1] : vector<1x16xf32> to vector<1xf32>
    %48 = vector.shape_cast %47 : vector<1xf32> to vector<1x1xf32>
    %49 = arith.addf %46, %48 : vector<1x1xf32>
    %c0_20 = arith.constant 0 : index
    %c0_21 = arith.constant 0 : index
    %50 = vector.load %arg13[%c0_20, %c0_21] : memref<1x1xf32, #tpu.memory_space<vmem>>, vector<1x1xf32>
    tpu.vector_store %arg13[%c0_20, %c0_21], %49 {strides = array<i32>} : memref<1x1xf32, #tpu.memory_space<vmem>>, vector<1x1xf32>,
    %c0_22 = arith.constant 0 : index
    %c0_23 = arith.constant 0 : index
    %51 = vector.load %arg14[%c0_22, %c0_23] : memref<1x128xf32, #tpu.memory_space<vmem>>, vector<1x128xf32>
    %52 = vector.broadcast %41 : vector<1x1xf32> to vector<1x128xf32>
    %53 = arith.mulf %52, %51 : vector<1x128xf32>
    %54 = arith.truncf %44 : vector<1x16xf32> to vector<1x16xbf16>
    %cst_24 = arith.constant dense<0.000000e+00> : vector<1x128xf32>
    %55 = tpu.matmul %54, %4, %cst_24 {dimension_numbers = #tpu.dot_dimension_numbers<[1], [0], [0], [1], [0, 0, 1, 1], [], []>} : vector<1x16xbf16>, vector<16x128xbf16>, vector<1x128xf32> -> vector<1x128xf32>
    %56 = arith.addf %53, %55 : vector<1x128xf32>
    %c0_25 = arith.constant 0 : index
    %c0_26 = arith.constant 0 : index
    %57 = vector.load %arg14[%c0_25, %c0_26] : memref<1x128xf32, #tpu.memory_space<vmem>>, vector<1x128xf32>
    tpu.vector_store %arg14[%c0_25, %c0_26], %56 {strides = array<i32>} : memref<1x128xf32, #tpu.memory_space<vmem>>, vector<1x128xf32>,
    %c0_27 = arith.constant 0 : index
    %c0_28 = arith.constant 0 : index
    %58 = vector.load %arg12[%c0_27, %c0_28] : memref<1x1xf32, #tpu.memory_space<vmem>>, vector<1x1xf32>
    tpu.vector_store %arg12[%c0_27, %c0_28], %39 {strides = array<i32>} : memref<1x1xf32, #tpu.memory_space<vmem>>, vector<1x1xf32>,
    %c2_i32_29 = arith.constant 2 : i32
    %59 = arith.cmpi eq, %arg1, %c2_i32_29 : i32
    %60 = arith.extui %59 : i1 to i32
    %c0_i32_30 = arith.constant 0 : i32
    %61 = arith.cmpi ne, %60, %c0_i32_30 : i32
    scf.if %61 {
      %c0_31 = arith.constant 0 : index
      %c0_32 = arith.constant 0 : index
      %62 = vector.load %arg14[%c0_31, %c0_32] : memref<1x128xf32, #tpu.memory_space<vmem>>, vector<1x128xf32>
      %c0_33 = arith.constant 0 : index
      %c0_34 = arith.constant 0 : index
      %63 = vector.load %arg13[%c0_33, %c0_34] : memref<1x1xf32, #tpu.memory_space<vmem>>, vector<1x1xf32>
      %64 = vector.broadcast %63 : vector<1x1xf32> to vector<1x128xf32>
      %65 = arith.divf %62, %64 : vector<1x128xf32>
      %66 = arith.truncf %65 : vector<1x128xf32> to vector<1x128xbf16>
      %c0_35 = arith.constant 0 : index
      %c0_36 = arith.constant 0 : index
      %67 = vector.load %arg7[%c0_35, %c0_36] : memref<128x128xbf16, #tpu.memory_space<vmem>>, vector<128x128xbf16>
      %cst_37 = arith.constant dense<0.000000e+00> : vector<1x128xf32>
      %68 = tpu.matmul %66, %67, %cst_37 {dimension_numbers = #tpu.dot_dimension_numbers<[1], [0], [0], [1], [0, 0, 1, 1], [], []>} : vector<1x128xbf16>, vector<128x128xbf16>, vector<1x128xf32> -> vector<1x128xf32>
      %c0_38 = arith.constant 0 : index
      %c0_39 = arith.constant 0 : index
      %69 = vector.load %arg8[%c0_38, %c0_39] : memref<1x128xf32, #tpu.memory_space<vmem>>, vector<1x128xf32>
      %70 = arith.addf %68, %69 : vector<1x128xf32>
      %cst_40 = arith.constant 0.000000e+00 : f32
      %71 = vector.broadcast %cst_40 : f32 to vector<1x128xf32>
      %72 = arith.maximumf %70, %71 : vector<1x128xf32>
      %73 = arith.truncf %72 : vector<1x128xf32> to vector<1x128xbf16>
      %c0_41 = arith.constant 0 : index
      %c0_42 = arith.constant 0 : index
      %74 = vector.load %arg9[%c0_41, %c0_42] : memref<128x128xbf16, #tpu.memory_space<vmem>>, vector<128x128xbf16>
      %cst_43 = arith.constant dense<0.000000e+00> : vector<1x128xf32>
      %75 = tpu.matmul %73, %74, %cst_43 {dimension_numbers = #tpu.dot_dimension_numbers<[1], [0], [0], [1], [0, 0, 1, 1], [], []>} : vector<1x128xbf16>, vector<128x128xbf16>, vector<1x128xf32> -> vector<1x128xf32>
      %c0_44 = arith.constant 0 : index
      %c0_45 = arith.constant 0 : index
      %76 = vector.load %arg10[%c0_44, %c0_45] : memref<1x128xf32, #tpu.memory_space<vmem>>, vector<1x128xf32>
      %77 = arith.addf %75, %76 : vector<1x128xf32>
      %c0_46 = arith.constant 0 : index
      %c0_47 = arith.constant 0 : index
      %c0_48 = arith.constant 0 : index
      %78 = vector.load %arg11[%c0_46, %c0_47, %c0_48] : memref<1x1x128xf32, #tpu.memory_space<vmem>>, vector<1x1x128xf32>
      %79 = vector.shape_cast %78 : vector<1x1x128xf32> to vector<1x128xf32>
      %80 = vector.shape_cast %77 : vector<1x128xf32> to vector<1x1x128xf32>
      tpu.vector_store %arg11[%c0_46, %c0_47, %c0_48], %80 {strides = array<i32>} : memref<1x1x128xf32, #tpu.memory_space<vmem>>, vector<1x1x128xf32>,
    } else {
    }
    return
  }
  func.func @transform_0(%arg0: i32, %arg1: i32) -> (i32, i32, i32) {
    %c0_i32 = arith.constant 0 : i32
    %c0_i32_0 = arith.constant 0 : i32
    return %arg0, %arg1, %c0_i32 : i32, i32, i32
  }
  func.func @transform_1(%arg0: i32, %arg1: i32) -> (i32, i32) {
    %c0_i32 = arith.constant 0 : i32
    %c0_i32_0 = arith.constant 0 : i32
    %c0_i32_1 = arith.constant 0 : i32
    return %c0_i32, %c0_i32_0 : i32, i32
  }
  func.func @transform_2(%arg0: i32, %arg1: i32) -> (i32, i32) {
    %c0_i32 = arith.constant 0 : i32
    %c0_i32_0 = arith.constant 0 : i32
    %c0_i32_1 = arith.constant 0 : i32
    return %c0_i32, %c0_i32_0 : i32, i32
  }
  func.func @transform_3(%arg0: i32, %arg1: i32) -> (i32, i32) {
    %c0_i32 = arith.constant 0 : i32
    %c0_i32_0 = arith.constant 0 : i32
    %c0_i32_1 = arith.constant 0 : i32
    return %c0_i32, %c0_i32_0 : i32, i32
  }
  func.func @transform_4(%arg0: i32, %arg1: i32) -> (i32, i32) {
    %c0_i32 = arith.constant 0 : i32
    %c0_i32_0 = arith.constant 0 : i32
    %c0_i32_1 = arith.constant 0 : i32
    return %c0_i32, %c0_i32_0 : i32, i32
  }
  func.func @transform_5(%arg0: i32, %arg1: i32) -> (i32, i32) {
    %c0_i32 = arith.constant 0 : i32
    %c0_i32_0 = arith.constant 0 : i32
    %c0_i32_1 = arith.constant 0 : i32
    return %c0_i32, %c0_i32_0 : i32, i32
  }
  func.func @transform_6(%arg0: i32, %arg1: i32) -> (i32, i32) {
    %c0_i32 = arith.constant 0 : i32
    %c0_i32_0 = arith.constant 0 : i32
    %c0_i32_1 = arith.constant 0 : i32
    return %c0_i32, %c0_i32_0 : i32, i32
  }
  func.func @transform_7(%arg0: i32, %arg1: i32) -> (i32, i32) {
    %c0_i32 = arith.constant 0 : i32
    %c0_i32_0 = arith.constant 0 : i32
    %c0_i32_1 = arith.constant 0 : i32
    return %c0_i32, %c0_i32_0 : i32, i32
  }
  func.func @transform_8(%arg0: i32, %arg1: i32) -> (i32, i32) {
    %c0_i32 = arith.constant 0 : i32
    %c0_i32_0 = arith.constant 0 : i32
    %c0_i32_1 = arith.constant 0 : i32
    return %c0_i32, %c0_i32_0 : i32, i32
  }
  func.func @transform_9(%arg0: i32, %arg1: i32) -> (i32, i32, i32) {
    %c0_i32 = arith.constant 0 : i32
    %c0_i32_0 = arith.constant 0 : i32
    %c0_i32_1 = arith.constant 0 : i32
    return %arg0, %c0_i32, %c0_i32_0 : i32, i32, i32
  }
}

</mosaic_0001>

<bundles_post_ra>
// kernel: tpu_custom_call.1
= control target key start
LH: loop header
LB: loop body
LE: loop exit
PB: predicated region body
PF: predicated region fallthrough
CT: control target
= control target key end

     0   :  { %s2110_s0 = inlined_call_operand.hbm [shape: bf16[2,48,128], index: 0, kind: input, shape index: {}]   ;;  %s2111_s1 = inlined_call_operand.hbm [shape: bf16[128,256], index: 1, kind: input, shape index: {}]   ;;  %s2112_s2 = inlined_call_operand.vmem [shape: f32[1,256], index: 2, kind: input, shape index: {}]   ;;  %s2113_s3 = inlined_call_operand.vmem [shape: bf16[1,128], index: 3, kind: input, shape index: {}]   ;;  %s2114_s4 = inlined_call_operand.<no memory space> [shape: f32[1,1], index: 4, kind: input, shape index: {}]   ;;  %s2115_s5 = inlined_call_operand.hbm [shape: bf16[128,128], index: 5, kind: input, shape index: {}]   ;;  %s2116_s6 = inlined_call_operand.vmem [shape: f32[1,128], index: 6, kind: input, shape index: {}]   ;;  %s2117_s7 = inlined_call_operand.hbm [shape: bf16[128,128], index: 7, kind: input, shape index: {}]   ;;  %s2118_s8 = inlined_call_operand.vmem [shape: f32[1,128], index: 8, kind: input, shape index: {}]   ;;  %s2119_s9 = inlined_call_operand.hbm [shape: f32[2,1,128], index: 9, kind: output, shape index: {}]  }
   0x1   :  { %2132 = sst [smem:[#allocation23_spill]] %s2111_s1  ;;  %v14_v0 = vstv %s2114_s4 }
   0x2   :  { %2133 = sst [smem:[#allocation24_spill]] %s2113_s3  ;;  %15 = vst [vmem:[#allocation5] sm:$0x1] %v14_v0 }
   0x3   :  { %2134 = sst [smem:[#allocation25_spill]] %s2115_s5 }
   0x4   :  { %2135 = sst [smem:[#allocation26_spill]] %s2116_s6 }
   0x5   :  { %2136 = sst [smem:[#allocation27_spill]] %s2118_s8 }
   0x6   :  { %2137 = sst [smem:[#allocation28_spill]] %s2119_s9 }
   0x7   :  { %16 = vsyncpa [#allocation7], 0 }
   0x8   :  { %18 = vsyncpa [#allocation7 + $0x1], 0 }
   0x9   :  { %19 = vsyncpa [#allocation10], 0 }
   0xa   :  { %20 = vsyncpa [#allocation13], 0 }
   0xb   :  { %21 = vsyncpa [#allocation8], 0 }
   0xc   :  { %23 = vsyncpa [#allocation8 + $0x1], 0  ;;  %s1757_s11 = smov 0   ;;  %s1759_s12 = smov 0  }
   0xd   :  { %s1761_s13 = smov 0   ;;  %s1763_s14 = smov 0  }
   0xe   :  { %s1765_s15 = smov 0   ;;  %s1767_s16 = smov 0  }
   0xf   :  { %s1769_s4 = smov 0   ;;  %s1771_s17 = smov 0  }
  0x10   :  { %s1773_s18 = smov 0   ;;  %s1775_s19 = smov 0  }
  0x11   :  { %s1777_s20 = smov 0  }
  0x12 LB: > { %2138 = sst [smem:[#allocation19_spill]] %s1645_s11  ;;  %s1102_s21 = sadd.s32 4294967295, %s1685_s20   ;;  %s1685_s20 = sphi %s1777_s20, %s29_s20   ;;  %s1681_s19 = sphi %s1775_s19, %s2178_s19   ;;  %s1677_s18 = sphi %s1773_s18, %s2177_s18   ;;  %s1673_s17 = sphi %s1771_s17, %s2176_s17   ;;  %s1669_s4 = sphi %s1769_s4, %s2175_s4   ;;  %s1665_s16 = sphi %s1767_s16, %s2174_s16   ;;  %s1661_s15 = sphi %s1765_s15, %s2173_s15   ;;  %s1657_s14 = sphi %s1763_s14, %s2172_s14   ;;  %s1653_s13 = sphi %s1761_s13, %s2171_s13   ;;  %s1649_s12 = sphi %s1759_s12, %s2170_s12   ;;  %s1645_s11 = sphi %s1757_s11, %s2169_s11  }
  0x13   : > { %2139 = sst [smem:[#allocation20_spill]] %s1673_s17  ;;  %s1103_s22 = sadd.s32 4294967294, %s1685_s20  }
  0x14   : > { %p63_p0 = scmp.ne.s32.totalorder %s1661_s15, %s1657_s14  ;;  %p1813_p1 = scmp.eq.s32.totalorder %s1102_s21, 0 }
  0x15   : > { %p254_p2 = scmp.ne.s32.totalorder %s1653_s13, %s1649_s12  ;;  %p255_p4 = scmp.eq.s32.totalorder %s1102_s21, 5 }
  0x16   : > { %s2140_s23 = scalar_select %p1813_p1, 1, 0 }
  0x17   : > { %p1821_p3 = por %p1813_p1, %p63_p0  ;;  %p260_p5 = scmp.ne.s32.totalorder %s1649_s12, %s1645_s11 }
  0x18   : > { %p261_p6 = scmp.eq.s32.totalorder %s1103_s22, 5  ;;  %p1827_p7 = por %p255_p4, %p254_p2 }
  0x19   : > { %s2141_s24 = scalar_select %p1821_p3, 1, 0 }
  0x1a   : > { %s2142_s25 = scalar_select %p1827_p7, 1, 0 }
  0x1b   : > { %p1104_p8 = scmp.ge.s32.totalorder %s1685_s20, 1  ;;  %p1832_p9 = por %p261_p6, %p260_p5 }
  0x1c   : > { %2143 = sst [smem:[#allocation21_spill]] %s2142_s25  ;;  %p268_p10 = scmp.lt.s32.totalorder %s1685_s20, 7 }
  0x1d   : > { %s2144_s26 = scalar_select %p1832_p9, 1, 0 }
  0x1e   : > { %p1837_p11 = pnand %p1104_p8, %p268_p10  ;;  %s1687_s28 = smov [#allocation9]  }
  0x1f   : > { %2145 = sst [smem:[#allocation22_spill]] %s2144_s26  ;;  %s280_s29 = sshll.u32 %s1687_s28, 4  ;;  %s281_s29 = int_to_ptr.vmem [resolvable:$true] %s280_s29 }
  0x20   : > { %s2146_s27 = scalar_select %p1837_p11, 1, 0 }
  0x21   : > { %p1250_p12 = pneg %p1837_p11  ;;  %s1688_s10 = smov [#allocation11]  }
  0x22   : > { %s302_s14 = sshll.u32 %s1688_s10, 4  ;;  %s2148_s1 = sld [smem:[#allocation23_spill]]  ;;  %s1849_s14 = int_to_ptr.vmem [resolvable:$true] %s302_s14 }
  0x23   : > { %p1845_p13 = pnand %p1250_p12, %p1813_p1 }
  0x25   : > { %p1859_p2 = pneg %p1845_p13 }
  0x28   : > { %s1441_s26 = scalar_lea.hbm %s2148_s1, 2048 }
  0x29   : > { %p1442_p0 = scmp.ne.s32.totalorder %s2148_s1, %s1441_s26  ;;  %p1448_p6 = scmp.lt.u32.totalorder %s1441_s26, %s2148_s1 }
  0x2b   : > { %p1444_p4 = pnand %p1859_p2, %p1442_p0 }
  0x2d   : > { %p1445_p5 = pneg %p1444_p4 }
  0x2f   : > { %p1450_p8 = pnand %p1448_p6, %p1445_p5 }
  0x31   : > { %1453 = shalt.err (!%p1450_p8)
}
  0x32   : > { %s1454_s21 = scalar_lea.vmem %s281_s29, 2048  ;;  %p1462_p7 = scmp.lt.s32.totalorder %s281_s29, %s281_s29 }
  0x33   : > { %p1455_p10 = scmp.ne.s32.totalorder %s281_s29, %s1454_s21  ;;  %p1463_p1 = scmp.lt.s32.totalorder %s1454_s21, %s1454_s21 }
  0x35   : > { %p1457_p12 = pnand %p1455_p10, %p1859_p2  ;;  %p1464_p3 = por %p1463_p1, %p1462_p7 }
  0x37   : > { %p1458_p9 = pneg %p1457_p12 }
  0x39   : > { %p1465_p11 = pnand %p1464_p3, %p1458_p9 }
  0x3b   : > { %1468 = shalt.err (!%p1465_p11)
}
  0x3c   : > { %s1689_s9 = smov 128   ;;  %s1690_s11 = smov 8  }
  0x3d   : > { %1253 = dma.hbm_to_vmem [thread:$0]  (!%p1845_p13), %s2148_s1, 2048, %s281_s29, [#allocation10], %s1689_s9, %s1689_s9, %s1690_s11  }
  0x3e   : > { %s2150_s5 = sld [smem:[#allocation25_spill]] }
  0x44   : > { %s1469_s17 = scalar_lea.hbm %s2150_s5, 1024 }
  0x45   : > { %p1470_p0 = scmp.ne.s32.totalorder %s2150_s5, %s1469_s17  ;;  %p1476_p7 = scmp.lt.u32.totalorder %s1469_s17, %s2150_s5 }
  0x47   : > { %p1472_p1 = pnand %p1470_p0, %p1859_p2 }
  0x49   : > { %p1473_p3 = pneg %p1472_p1 }
  0x4b   : > { %p1478_p9 = pnand %p1476_p7, %p1473_p3 }
  0x4d   : > { %1481 = shalt.err (!%p1478_p9)
}
  0x4e   : > { %s1482_s29 = scalar_lea.vmem %s1849_s14, 1024  ;;  %p1490_p6 = scmp.lt.s32.totalorder %s1849_s14, %s1849_s14 }
  0x4f   : > { %p1483_p11 = scmp.ne.s32.totalorder %s1849_s14, %s1482_s29  ;;  %p1491_p8 = scmp.lt.s32.totalorder %s1482_s29, %s1482_s29 }
  0x51   : > { %p1485_p4 = pnand %p1483_p11, %p1859_p2  ;;  %p1492_p10 = por %p1491_p8, %p1490_p6 }
  0x53   : > { %p1486_p5 = pneg %p1485_p4 }
  0x55   : > { %p1493_p12 = pnand %p1492_p10, %p1486_p5 }
  0x57   : > { %1496 = shalt.err (!%p1493_p12)
}
  0x58   : > { %s2130_s6 = smov 64   ;;  %s2131_s3 = smov 4  }
  0x59   : > { %1256 = dma.hbm_to_vmem [thread:$0]  (!%p1845_p13), %s2150_s5, 1024, %s1849_s14, [#allocation10], %s2130_s6, %s2130_s6, %s2131_s3  }
  0x5a   : > { %s1693_s9 = smov [#allocation12]   ;;  %s1497_s22 = scalar_lea.hbm %s2117_s7, 1024 }
  0x5b   : > { %s318_s11 = sshll.u32 %s1693_s9, 4  ;;  %p1498_p0 = scmp.ne.s32.totalorder %s2117_s7, %s1497_s22  ;;  %s319_s11 = int_to_ptr.vmem [resolvable:$true] %s318_s11 }
  0x5c   : > { %p1504_p7 = scmp.lt.u32.totalorder %s1497_s22, %s2117_s7 }
  0x5d   : > { %p1500_p1 = pnand %p1498_p0, %p1859_p2 }
  0x5f   : > { %p1501_p3 = pneg %p1500_p1 }
  0x61   : > { %p1506_p9 = pnand %p1504_p7, %p1501_p3 }
  0x63   : > { %1509 = shalt.err (!%p1506_p9)
}
  0x64   : > { %s1510_s14 = scalar_lea.vmem %s319_s11, 1024  ;;  %p1518_p6 = scmp.lt.s32.totalorder %s319_s11, %s319_s11 }
  0x65   : > { %p1511_p11 = scmp.ne.s32.totalorder %s319_s11, %s1510_s14  ;;  %p1519_p8 = scmp.lt.s32.totalorder %s1510_s14, %s1510_s14 }
  0x67   : > { %p1513_p4 = pnand %p1511_p11, %p1859_p2  ;;  %p1520_p10 = por %p1519_p8, %p1518_p6 }
  0x69   : > { %p1514_p5 = pneg %p1513_p4 }
  0x6b   : > { %p1521_p12 = pnand %p1520_p10, %p1514_p5 }
  0x6d   : > { %1524 = shalt.err (!%p1521_p12)
}
  0x6e   : > { %1259 = dma.hbm_to_vmem [thread:$0]  (!%p1845_p13), %s2117_s7, 1024, %s319_s11, [#allocation13], %s2130_s6, %s2130_s6, %s2131_s3  }
  0x6f   : > { %s38_s28 = sadd.s32 1, %s1677_s18  ;;  %s41_s30 = sadd.s32 1, %s1681_s19 }
  0x70   : > { %p39_p2 = scmp.ge.s32.totalorder %s38_s28, 3  ;;  %s244_s17 = sadd.s32 1, %s1653_s13 }
  0x71   : > { %s50_s9 = sadd.s32 1, %s1665_s16  ;;  %p57_p0 = scmp.ne.s32.totalorder %s1665_s16, %s1661_s15 }
  0x72   : > { %s2180_s28 = smov (%p39_p2, %s38_s28), 0  ;;  %s2182_s30 = smov (!%p39_p2, %s41_s30), %s1681_s19 }
  0x73   : > { %p58_p1 = scmp.eq.s32.totalorder %s1685_s20, 0  ;;  %p43_p3 = scmp.ge.s32.totalorder %s2182_s30, 2 }
  0x74   : > { %s46_s25 = ssub.s32 %s1677_s18, %s2180_s28  ;;  %p1271_p13 = scmp.lt.s32.totalorder %s1685_s20, 6 }
  0x75   : > { %s335_s11 = sand.u32 1, %s1665_s16   ;;  %s2184_s30 = smov (%p43_p3, %s2182_s30), 0 }
  0x76   : > { %p59_p7 = por %p58_p1, %p57_p0  ;;  %s1109_s26 = sshll.u32 %s335_s11, 3 }
  0x77   : > { %s45_s22 = ssub.s32 %s1681_s19, %s2184_s30  ;;  %s1110_s21 = sshll.u32 %s1677_s18, 1 }
  0x78   : > { %s47_s10 = sor.u32 %s46_s25, %s45_s22  ;;  %p242_p9 = scmp.eq.s32.totalorder %s45_s22, 0 }
  0x79   : > { %p48_p11 = scmp.eq.s32.totalorder %s47_s10, 0  ;;  %s1233_s1 = smul.u32 6, %s1681_s19 }
  0x7a   : > { %s1942_s29 = scalar_select %p242_p9, %s1653_s13, %s244_s17  }
  0x7b   : > { %s1945_s14 = scalar_select %p48_p11, %s1665_s16, %s50_s9  }
  0x7c   : > { %s339_s8 = scalar_lea.vmem [#allocation6], %s1109_s26  ;;  %p1950_p4 = pnand %p1271_p13, %p59_p7 }
  0x7d   : > { %s348_s6 = sshll.u32 %s339_s8, 4  ;;  %s345_s5 = sadd.s32 %s1233_s1, %s1110_s21  ;;  %s1954_s6 = int_to_ptr.vmem [resolvable:$true] %s348_s6 }
  0x7e   : > { %s1111_s25 = sshll.u32 %s345_s5, 6  ;;  %s1961_s9 = scalar_lea.sflag [#allocation7], %s335_s11 }
  0x7f   : > { %s1959_s17 = scalar_lea.hbm %s2110_s0, %s1111_s25  ;;  %p1527_p6 = pneg %p1950_p4 }
  0x80   : > { %s1525_s26 = scalar_lea.hbm %s1959_s17, 128  ;;  %s1530_s1 = scalar_lea.hbm %s2110_s0, 768 }
  0x81   : > { %p1526_p5 = scmp.ne.s32.totalorder %s1959_s17, %s1525_s26  ;;  %p1531_p12 = scmp.lt.u32.totalorder %s1959_s17, %s2110_s0 }
  0x82   : > { %p1532_p2 = scmp.lt.u32.totalorder %s1530_s1, %s1525_s26  ;;  %p1534_p1 = scmp.lt.u32.totalorder %s1525_s26, %s1959_s17 }
  0x83   : > { %p1528_p8 = pnand %p1527_p6, %p1526_p5 }
  0x84   : > { %p1533_p0 = por %p1532_p2, %p1531_p12 }
  0x85   : > { %p1529_p10 = pneg %p1528_p8 }
  0x86   : > { %p1535_p3 = por %p1534_p1, %p1533_p0 }
  0x88   : > { %p1536_p13 = pnand %p1535_p3, %p1529_p10 }
  0x8a   : > { %1539 = shalt.err (!%p1536_p13)
}
  0x8b   : > { %s1540_s11 = scalar_lea.vmem %s1954_s6, 128  ;;  %s1694_s22 = smov [#allocation6]  }
  0x8c   : > { %p1541_p7 = scmp.ne.s32.totalorder %s1954_s6, %s1540_s11  ;;  %s1545_s10 = sshll.u32 %s1694_s22, 4  ;;  %s1546_s10 = int_to_ptr.vmem [resolvable:$false] %s1545_s10 }
  0x8d   : > { %s1547_s5 = scalar_lea.vmem %s1546_s10, 256  ;;  %p1548_p5 = scmp.lt.s32.totalorder %s1954_s6, %s1546_s10 }
  0x8e   : > { %p1543_p9 = pnand %p1541_p7, %p1527_p6  ;;  %p1549_p8 = scmp.lt.s32.totalorder %s1547_s5, %s1540_s11 }
  0x90   : > { %p1544_p11 = pneg %p1543_p9  ;;  %p1550_p12 = por %p1549_p8, %p1548_p5 }
  0x92   : > { %p1551_p2 = pnand %p1550_p12, %p1544_p11 }
  0x94   : > { %1554 = shalt.err (!%p1551_p2)
}
  0x95   : > { %s2152_s26 = smov 4   ;;  %s2153_s21 = smov 64  }
  0x96   : > { %1263 = dma.hbm_to_vmem [thread:$0]  (!%p1950_p4), %s1959_s17, 128, %s1954_s6, %s1961_s9, %s2153_s21, %s2153_s21, %s2152_s26  }
  0x97   : > { %p2154_p6 = scmp.ne.s32.totalorder %s2146_s27, 0 }
  0x98   : > { %s362_s1 = sand.u32 (!%p2154_p6), 1, %s1661_s15   ;;  %p2155_p10 = scmp.ne.s32.totalorder (!%p2154_p6), %s2141_s24, 0 }
  0x99   : > { %360 = sbr.rel (%p2154_p6) target bundleno = 1726 (0x6be), region = 56  ;;  %s1995_s8 = sshll.u32 (!%p2154_p6), %s362_s1, 3 }
  0x9a   : > { %s363_s25 = scalar_lea.sflag (!%p2154_p6), [#allocation7], %s362_s1  ;;  %s366_s11 = scalar_lea.vmem (!%p2154_p6), [#allocation6], %s1995_s8 }
  0xa0   : > { %1628 = dma.done.wait (%p2155_p10), %s363_s25, 128  }
  0xa1   : > { %1630 = vsyncadd (%p2155_p10), %s363_s25, 4294967168  ;;  %p2156_p0 = scmp.ne.s32.totalorder %s2140_s23, 0 }
  0xa3   : > { %1632 = dma.done.wait (%p2156_p0), [#allocation10], 3072  }
  0xa4   : > { %1634 = vsyncadd (%p2156_p0), [#allocation10], 4294964224 }
  0xa5   : > { %1636 = dma.done.wait (%p2156_p0), [#allocation13], 1024  }
  0xa6   : > { %1638 = vsyncadd (%p2156_p0), [#allocation13], 4294966272  ;;  %s410_s27 = sand.u32 1, %s1649_s12   ;;  %p1117_p4 = scmp.ne.s32.totalorder %s1669_s4, 0 }
  0xa7   : > { %s2013_s6 = scalar_lea.vmem [#allocation14], %s410_s27  ;;  %vm418_vm0 = vcmask (!%p1117_p4), 0   ;;  %v1695_v1 = vmov (!%p1117_p4), -inf   ;;  %v1696_v2 = vmov (!%p1117_p4), 0.0  }
  0xa8   : > { %417 = sbr.rel (%p1117_p4) target bundleno = 175 (0xaf), region = 76  ;;  %419 = vst.msk [vmem:[#allocation2] sm:$0x1] (!%p1117_p4), %vm418_vm0, %v1695_v1  ;;  %420 = vst.msk [vmem:[#allocation3] sm:$0x1] (!%p1117_p4), %vm418_vm0, %v1696_v2 }
  0xa9   : > { %421 = vst [vmem:[#allocation4] sm:$0x1] (!%p1117_p4), %v1696_v2 }
  0xaf PF: > { %v1381_v3 = vld [vmem:[#allocation9 + $0x4] ss:$8 sps:$4 sm:$0xff]   ;;  %v1383_v4 = vld [vmem:[#allocation9] ss:$8 sps:$4 sm:$0xff]   ;;  %v1697_v5 = vmov 0   ;;  %v1405_v20 = vld [vmem:[%s366_s11] sm:$0xff]   ;;  %v442_v23 = vlaneseq }
  0xb0   : > { %570 = vmatprep.mubr.bf16.mxu0 %v1697_v5  ;;  %1379 = vset.pattern.permute.xlu0 %v1697_v5  ;;  %v1384_v6 = vld [vmem:[#allocation9 + $0x14] ss:$8 sps:$4 sm:$0xff]   ;;  %v1386_v7 = vld [vmem:[#allocation9 + $0x10] ss:$8 sps:$4 sm:$0xff]   ;;  %v1387_v8 = vld [vmem:[#allocation9 + $0x24] ss:$8 sps:$4 sm:$0xff]  }
  0xb1   : > { %538 = vmatprep.subr.bf16.mxu0 %v1381_v3  ;;  %1380 = vset.pattern.permute.xlu1 %v1697_v5  ;;  %v1389_v9 = vld [vmem:[#allocation9 + $0x20] ss:$8 sps:$4 sm:$0xff]   ;;  %v1390_v10 = vld [vmem:[#allocation9 + $0x34] ss:$8 sps:$4 sm:$0xff]   ;;  %v1392_v11 = vld [vmem:[#allocation9 + $0x30] ss:$8 sps:$4 sm:$0xff]  }
  0xb2   : > { %539 = vmatpush1.bf16.msra.mxu0 %v1383_v4  ;;  %v1393_v12 = vld [vmem:[#allocation9 + $0x44] ss:$8 sps:$4 sm:$0xff]   ;;  %v1395_v13 = vld [vmem:[#allocation9 + $0x40] ss:$8 sps:$4 sm:$0xff]   ;;  %v1396_v14 = vld [vmem:[#allocation9 + $0x54] ss:$8 sps:$4 sm:$0xff]  }
  0xb3   : > { %540 = vmatprep.subr.bf16.mxu0 %v1384_v6  ;;  %v1398_v15 = vld [vmem:[#allocation9 + $0x50] ss:$8 sps:$4 sm:$0xff]   ;;  %v1399_v16 = vld [vmem:[#allocation9 + $0x64] ss:$8 sps:$4 sm:$0xff]   ;;  %v1401_v17 = vld [vmem:[#allocation9 + $0x60] ss:$8 sps:$4 sm:$0xff]  }
  0xb4   : > { %v1402_v18 = vld [vmem:[#allocation9 + $0x74] ss:$8 sps:$4 sm:$0xff]   ;;  %v1404_v19 = vld [vmem:[#allocation9 + $0x70] ss:$8 sps:$4 sm:$0xff]   ;;  %v1698_v21 = vmov 0.0   ;;  %vm1699_vm1 = vmmov 0  }
  0xb5   : > { %1181 = vmatprep.subr.bf16.mxu1 %v1698_v21  ;;  %1183 = vmatprep.mubr.msk.bf16.mxu1 %vm1699_vm1, %v1698_v21  ;;  %v599_v22 = vld [vmem:[#allocation5] sm:$0x1]  ;;  %v443_v24 = vshrl.u32 %v442_v23, 7  ;;  %v440_v26 = vld [vmem:[%s2112_s2] sm:$0x3]  ;;  %s2157_s9 = sld [smem:[#allocation24_spill]] }
  0xb6   : > { %541 = vmatpush1.bf16.msra.mxu0 %v1386_v7  ;;  %602 = vperm.xlu0 %1379, %v599_v22   ;;  %p655_p1 = scmp.lt.s32.totalorder %s1669_s4, 2  ;;  %s1137_s22 = sshll.u32 %s1669_s4, 4  ;;  %v650_v52 = vand.u32 127, %v442_v23  ;;  %vm662_vm5 = vcmask 122880   ;;  %v661_v1 = vld [vmem:[#allocation2] sm:$0x1] }
  0xb7   : > { %542 = vmatprep.subr.bf16.mxu0 %v1387_v8  ;;  %v448_v25 = vsub.s32 1, %v443_v24  ;;  %v2022_v35 = vsub.s32 0, %v443_v24  ;;  %v652_v53 = vstv %s1137_s22  ;;  %vm688_vm6 = vcmask 0   ;;  %p1139_p3 = scmp.ne.s32.totalorder %s1669_s4, 2 }
  0xb8   : > { %s656_s10 = scalar_select %p655_p1, 1, 0  ;;  %v653_v54 = vadd.s32 %v652_v53, %v650_v52  ;;  %vm702_vm7 = vcmask 130048  }
  0xb9   : > { %v449_v27 = vrot.slane %v440_v26, %v448_v25  ;;  %v445_v37 = vrot.slane %v440_v26, %v2022_v35  ;;  %vm1702_vm8 = vmmov (!%p1139_p3), 0   ;;  %v1438_v52 = vld [vmem:[#allocation12 + $0x38] sm:$0xff] (!%p1139_p3)   ;;  %s2158_s26 = sld [smem:[#allocation26_spill]] (!%p1139_p3)  ;;  %s2159_s8 = sld [smem:[#allocation27_spill]] (!%p1139_p3) }
  0xba   : > { %543 = vmatpush1.bf16.msra.mxu0 %v1389_v9  ;;  %v657_v56 = vstv %s656_s10  ;;  %vm654_vm2 = vcmp.lt.s32.totalorder %v653_v54, 40 }
  0xbb   : > { %544 = vmatprep.subr.bf16.mxu0 %v1390_v10  ;;  %v597_v51 = vld [vmem:[%s2157_s9] sm:$0x1]  ;;  %vm658_vm3 = vcmp.eq.s32.totalorder %v657_v56, 1 }
  0xbc   : > { %vm659_vm4 = vmor %vm654_vm2, %vm658_vm3 }
  0xbe   : > { %545 = vmatpush1.bf16.msra.mxu0 %v1392_v11 }
  0xbf   : > { %546 = vmatprep.subr.bf16.mxu0 %v1393_v12  ;;  %v783_v53 = vld [vmem:[%s2158_s26] sm:$0x1] (!%p1139_p3) }
  0xc2   : > { %547 = vmatpush1.bf16.msra.mxu0 %v1395_v13 }
  0xc3   : > { %548 = vmatprep.subr.bf16.mxu0 %v1396_v14  ;;  %v682_v14 = vld [vmem:[#allocation3] sm:$0x1] }
  0xc6   : > { %549 = vmatpush1.bf16.msra.mxu0 %v1398_v15 }
  0xc7   : > { %550 = vmatprep.subr.bf16.mxu0 %v1399_v16 }
  0xca   : > { %551 = vmatpush1.bf16.msra.mxu0 %v1401_v17 }
  0xcb   : > { %552 = vmatprep.subr.bf16.mxu0 %v1402_v18 }
  0xce   : > { %553 = vmatpush1.bf16.msra.mxu0 %v1404_v19 }
  0xd1   : > { %571 = vmatmul.mubr.bf16.vlgmr.msra.gmra.mrb[0].mxu0 %v1405_v20 }
 0x135   : > { %v603_v55 = vpop.permute.xlu0 %602 }
 0x136   : > { %v608_v57 = vrot.slane %v603_v55, %v2022_v35 }
 0x1a4   : > { %v572_v28 = vpop.f32.mrb[0].mxu0 }
 0x1a5   : > { %v574_v29 = vpop.f32.mrb[1].mxu0  ;;  %v573_v38 = vadd.f32 %v572_v28, %v445_v37  ;;  %v1700_v28 = vmov (!%p1139_p3), 0  }
 0x1a6   : > { %v575_v30 = vadd.f32 %v574_v29, %v449_v27  ;;  %v576_v31 = vpop.f32.mrb[2].mxu0  ;;  %v1701_v29 = vmov (!%p1139_p3), 0.0  }
 0x1a7   : > { %v578_v32 = vpop.f32.mrb[3].mxu0  ;;  %v577_v40 = vadd.f32 %v576_v31, %v445_v37  ;;  %1193 = vmatprep.subr.bf16.mxu0 (!%p1139_p3), %v1701_v29  ;;  %v1424_v31 = vld [vmem:[#allocation11 + $0x8] sm:$0xff] (!%p1139_p3)   ;;  %1209 = vmatprep.mubr.msk.bf16.mxu0 (!%p1139_p3), %vm1702_vm8, %v1701_v29  ;;  %v1431_v37 = vld [vmem:[#allocation12] sm:$0xff] (!%p1139_p3)  }
 0x1a8   : > { %v1135_v33 = vmul.f32 -1.442695, %v575_v30  ;;  %v579_v34 = vadd.f32 %v578_v32, %v449_v27  ;;  %v1423_v30 = vld [vmem:[#allocation11] sm:$0xff] (!%p1139_p3)   ;;  %v1425_v32 = vld [vmem:[#allocation11 + $0x10] sm:$0xff] (!%p1139_p3)  }
 0x1a9   : > { %1194 = vmatpush3.bf16.msra.mxu0 (!%p1139_p3), %v1423_v30 }
 0x1aa   : > { %1406 = vpow2.f32 %v1135_v33  ;;  %v1136_v36 = vmul.f32 -1.442695, %v579_v34  ;;  %1195 = vmatprep.subr.bf16.mxu0 (!%p1139_p3), %v1701_v29  ;;  %v1426_v33 = vld [vmem:[#allocation11 + $0x18] sm:$0xff] (!%p1139_p3)   ;;  %v1427_v34 = vld [vmem:[#allocation11 + $0x20] sm:$0xff] (!%p1139_p3)  }
 0x1ac   : > { %1408 = vpow2.f32 %v1136_v36  ;;  %v1428_v36 = vld [vmem:[#allocation11 + $0x28] sm:$0xff] (!%p1139_p3)  }
 0x1ad   : > { %1410 = vtanh.f32 %v573_v38  ;;  %1196 = vmatpush3.bf16.msra.mxu0 (!%p1139_p3), %v1424_v31  ;;  %v1432_v38 = vld [vmem:[#allocation12 + $0x8] sm:$0xff] (!%p1139_p3)  }
 0x1ae   : > { %1197 = vmatprep.subr.bf16.mxu0 (!%p1139_p3), %v1701_v29 }
 0x1b1   : > { %1198 = vmatpush3.bf16.msra.mxu0 (!%p1139_p3), %v1425_v32 }
 0x1b2   : > { %1199 = vmatprep.subr.bf16.mxu0 (!%p1139_p3), %v1701_v29 }
 0x1b4   : > { %v1407_v39 = vpop.eup %1406 }
 0x1b5   : > { %v589_v41 = vadd.f32 1.0, %v1407_v39  ;;  %1200 = vmatpush3.bf16.msra.mxu0 (!%p1139_p3), %v1426_v33  ;;  %v1429_v39 = vld [vmem:[#allocation11 + $0x30] sm:$0xff] (!%p1139_p3)  }
 0x1b6   : > { %v1409_v42 = vpop.eup %1408  ;;  %1201 = vmatprep.subr.bf16.mxu0 (!%p1139_p3), %v1701_v29 }
 0x1b7   : > { %1412 = vrcp.f32 %v589_v41  ;;  %v590_v43 = vadd.f32 1.0, %v1409_v42  ;;  %v1411_v44 = vpop.eup %1410  ;;  %v1430_v41 = vld [vmem:[#allocation11 + $0x38] sm:$0xff] (!%p1139_p3)  }
 0x1b8   : > { %1414 = vtanh.f32 %v577_v40  ;;  %v1433_v40 = vld [vmem:[#allocation12 + $0x10] sm:$0xff] (!%p1139_p3)   ;;  %v1434_v42 = vld [vmem:[#allocation12 + $0x18] sm:$0xff] (!%p1139_p3)  }
 0x1b9   : > { %1416 = vrcp.f32 %v590_v43  ;;  %1202 = vmatpush3.bf16.msra.mxu0 (!%p1139_p3), %v1427_v34  ;;  %v1435_v43 = vld [vmem:[#allocation12 + $0x20] sm:$0xff] (!%p1139_p3)  }
 0x1ba   : > { %1203 = vmatprep.subr.bf16.mxu0 (!%p1139_p3), %v1701_v29 }
 0x1bd   : > { %1204 = vmatpush3.bf16.msra.mxu0 (!%p1139_p3), %v1428_v36 }
 0x1be   : > { %1205 = vmatprep.subr.bf16.mxu0 (!%p1139_p3), %v1701_v29 }
 0x1c1   : > { %v1413_v45 = vpop.eup %1412  ;;  %1206 = vmatpush3.bf16.msra.mxu0 (!%p1139_p3), %v1429_v39 }
 0x1c2   : > { %v1415_v46 = vpop.eup %1414  ;;  %v595_v47 = vmul.f32 %v1413_v45, %v1411_v44  ;;  %1207 = vmatprep.subr.bf16.mxu0 (!%p1139_p3), %v1701_v29  ;;  %v1436_v44 = vld [vmem:[#allocation12 + $0x28] sm:$0xff] (!%p1139_p3)  }
 0x1c3   : > { %v1417_v48 = vpop.eup %1416 }
 0x1c4   : > { %v596_v49 = vmul.f32 %v1417_v48, %v1415_v46 }
 0x1c5   : > { %1208 = vmatpush3.bf16.msra.mxu0 (!%p1139_p3), %v1430_v41 }
 0x1c6   : > { %v598_v50 = vpack.c.bf16 %v596_v49, %v595_v47 }
 0x1c8   : > { %1182 = vmatpush3.bf16.xpose.msra.mxu1 %v598_v50 }
 0x1c9   : > { %1187 = vmatprep.subr.bf16.mxu1 %v1698_v21 }
 0x1cf   : > { %1184 = vmatmul.mubr.bf16.vlgmr.msra.gmra.mrb[0].mxu1 %v597_v51  ;;  %v1437_v51 = vld [vmem:[#allocation12 + $0x30] sm:$0xff] (!%p1139_p3)  }
 0x1d0   : > { %1188 = vmatpush3.bf16.msra.mxu1 %v1405_v20  ;;  %1189 = vmatprep.mubr.msk.bf16.mxu1 %vm1699_vm1, %v1698_v21  ;;  %v690_v20 = vld [vmem:[#allocation4] sm:$0x1] }
 0x1d1   : > { %1213 = vmatprep.subr.bf16.mxu1 (!%p1139_p3), %v1701_v29 }
 0x2a2   : > { %v643_v58 = vpop.f32.mrb[0].mxu1 }
 0x2a3   : > { %v644_v59 = vadd.f32 %v643_v58, %v608_v57  ;;  %v1185_v60 = vpop.f32.mrb[1].mxu1 }
 0x2a4   : > { %v646_v61 = vpop.f32.mrb[2].mxu1  ;;  %v890_v60 = vld [vmem:[%s2159_s8] sm:$0x1] (!%p1139_p3) }
 0x2a5   : > { %v1186_v62 = vpop.f32.mrb[3].mxu1  ;;  %v660_v63 = vsel %vm659_vm4, %v644_v59, -inf }
 0x2a6   : > { %v663_v0 = vsel %vm662_vm5, %v660_v63, -inf }
 0x2a7   : > { %664 = vmax.xlane.f32.xlu0 %v663_v0 }
 0x334   : > { %v665_v2 = vpop.xlane.xlu0 %664 }
 0x335   : > { %v666_v3 = vmax.f32 %v661_v1, %v665_v2 }
 0x337   : > { %v667_v4 = vsub.f32 %v661_v1, %v666_v3  ;;  %748 = vst.msk [vmem:[#allocation2] sm:$0x1] %vm688_vm6, %v666_v3  ;;  %672 = vperm.xlu1 %1380, %v666_v3  }
 0x339   : > { %v668_v5 = vmul.f32 1.442695, %v667_v4 }
 0x33b   : > { %1418 = vpow2.f32 %v668_v5 }
 0x345   : > { %v1419_v6 = vpop.eup %1418 }
 0x346   : > { %693 = vperm.xlu0 %1379, %v1419_v6   ;;  %v683_v15 = vmul.f32 %v1419_v6, %v682_v14 }
 0x34a   : > { %1422 = vset.pattern.permute.xlu0 (!%p1139_p3), %v1700_v28 }
 0x3b6   : > { %v673_v7 = vpop.permute.xlu1 %672 }
 0x3b7   : > { %v678_v8 = vrot.slane %v673_v7, %v2022_v35 }
 0x3b9   : > { %v679_v9 = vsub.f32 %v660_v63, %v678_v8 }
 0x3bb   : > { %v680_v10 = vmul.f32 1.442695, %v679_v9 }
 0x3bd   : > { %1420 = vpow2.f32 %v680_v10 }
 0x3c5   : > { %v694_v18 = vpop.permute.xlu0 %693 }
 0x3c6   : > { %v699_v19 = vrot.slane %v694_v18, %v2022_v35 }
 0x3c7   : > { %v1421_v11 = vpop.eup %1420 }
 0x3c8   : > { %v684_v12 = vsel %vm662_vm5, %v1421_v11, 0.0  ;;  %v701_v13 = vpack.c.bf16 %v1421_v11, %v1421_v11  ;;  %v700_v21 = vmul.f32 %v699_v19, %v690_v20 }
 0x3c9   : > { %685 = vadd.xlane.f32.xlu1 %v684_v12 }
 0x3ca   : > { %1190 = vmatmul.mubr.msk.bf16.vlgmr.msra.gmra.mrb[4].mxu1 %vm702_vm7, %v701_v13 }
 0x3cb   : > { %1229 = vmatprep.mubr.msk.bf16.mxu1 (!%p1139_p3), %vm1702_vm8, %v1701_v29  ;;  %1214 = vmatpush3.bf16.msra.mxu1 (!%p1139_p3), %v1431_v37 }
 0x3cc   : > { %1215 = vmatprep.subr.bf16.mxu1 (!%p1139_p3), %v1701_v29 }
 0x3cf   : > { %1216 = vmatpush3.bf16.msra.mxu1 (!%p1139_p3), %v1432_v38 }
 0x3d0   : > { %1217 = vmatprep.subr.bf16.mxu1 (!%p1139_p3), %v1701_v29 }
 0x3d3   : > { %1218 = vmatpush3.bf16.msra.mxu1 (!%p1139_p3), %v1433_v40 }
 0x3d4   : > { %1219 = vmatprep.subr.bf16.mxu1 (!%p1139_p3), %v1701_v29 }
 0x3d7   : > { %1220 = vmatpush3.bf16.msra.mxu1 (!%p1139_p3), %v1434_v42 }
 0x3d8   : > { %1221 = vmatprep.subr.bf16.mxu1 (!%p1139_p3), %v1701_v29 }
 0x3db   : > { %1222 = vmatpush3.bf16.msra.mxu1 (!%p1139_p3), %v1435_v43 }
 0x3dc   : > { %1223 = vmatprep.subr.bf16.mxu1 (!%p1139_p3), %v1701_v29 }
 0x3df   : > { %1224 = vmatpush3.bf16.msra.mxu1 (!%p1139_p3), %v1436_v44 }
 0x3e0   : > { %1225 = vmatprep.subr.bf16.mxu1 (!%p1139_p3), %v1701_v29 }
 0x3e3   : > { %1226 = vmatpush3.bf16.msra.mxu1 (!%p1139_p3), %v1437_v51 }
 0x3e4   : > { %1227 = vmatprep.subr.bf16.mxu1 (!%p1139_p3), %v1701_v29 }
 0x3e7   : > { %1228 = vmatpush3.bf16.msra.mxu1 (!%p1139_p3), %v1438_v52 }
 0x456   : > { %v686_v16 = vpop.xlane.xlu1 %685 }
 0x457   : > { %v687_v17 = vadd.f32 %v686_v16, %v683_v15 }
 0x459   : > { %689 = vst.msk [vmem:[#allocation3] sm:$0x1] %vm688_vm6, %v687_v17 }
 0x460   : > { %v754_v27 = vld [vmem:[#allocation3] sm:$0x1] (!%p1139_p3) }
 0x461   : > { %757 = vperm.xlu0 (!%p1139_p3), %1422, %v754_v27  }
 0x49a   : > { %752 = sbr.rel (%p1139_p3) target bundleno = 1699 (0x6a3), region = 80 }
 0x49d   : > { %v740_v22 = vpop.f32.mrb[4].mxu1 }
 0x49e   : > { %v746_v23 = vadd.f32 %v740_v22, %v700_v21  ;;  %v1191_v24 = vpop.f32.mrb[5].mxu1 }
 0x49f   : > { %v743_v25 = vpop.f32.mrb[6].mxu1 }
 0x4a0   : > { %747 = vst [vmem:[#allocation4] sm:$0x1] %v746_v23  ;;  %v1192_v26 = vpop.f32.mrb[7].mxu1 }
 0x4a7   : > { %v753_v47 = vld [vmem:[#allocation4] sm:$0x1] }
 0x4e0   : > { %v758_v45 = vpop.permute.xlu0 %757 }
 0x4e1   : > { %v763_v46 = vrot.slane %v758_v45, %v2022_v35 }
 0x4e3   : > { %1439 = vrcp.f32 %v763_v46 }
 0x4ed   : > { %v1440_v48 = vpop.eup %1439 }
 0x4ee   : > { %v765_v49 = vmul.f32 %v1440_v48, %v753_v47 }
 0x4f0   : > { %v766_v50 = vpack.c.bf16 %v765_v49, %v765_v49 }
 0x4f2   : > { %1210 = vmatmul.mubr.bf16.vlgmr.msra.gmra.mrb[0].mxu0 %v766_v50 }
 0x5c5   : > { %v866_v54 = vpop.f32.mrb[0].mxu0 }
 0x5c6   : > { %v867_v55 = vadd.f32 %v866_v54, %v783_v53  ;;  %v1211_v56 = vpop.f32.mrb[1].mxu0 }
 0x5c7   : > { %v869_v35 = vpop.f32.mrb[2].mxu0 }
 0x5c8   : > { %v872_v57 = vmax.f32 %v867_v55, 0.0  ;;  %v1212_v58 = vpop.f32.mrb[3].mxu0 }
 0x5ca   : > { %v873_v59 = vpack.c.bf16 %v872_v57, %v872_v57 }
 0x5cc   : > { %1230 = vmatmul.mubr.bf16.vlgmr.msra.gmra.mrb[0].mxu1 %v873_v59 }
 0x69f   : > { %v973_v61 = vpop.f32.mrb[0].mxu1 }
 0x6a0   : > { %v974_v62 = vadd.f32 %v973_v61, %v890_v60  ;;  %v1231_v63 = vpop.f32.mrb[1].mxu1 }
 0x6a1   : > { %v976_v0 = vpop.f32.mrb[2].mxu1 }
 0x6a2   : > { %979 = vst [vmem:[%s2013_s6] sm:$0x1] %v974_v62  ;;  %v1232_v1 = vpop.f32.mrb[3].mxu1 }
 0x6a3 PF: > { %s2160_s25 = sld [smem:[#allocation20_spill]]  ;;  %s2161_s11 = sld [smem:[#allocation21_spill]] }
 0x6a4   : > { %s2162_s17 = sld [smem:[#allocation28_spill]]  ;;  %s993_s10 = sshll.u32 %s2013_s6, 4  ;;  %s994_s10 = int_to_ptr.vmem [resolvable:$true] %s993_s10 }
 0x6a5   : > { %s981_s4 = scalar_lea.sflag [#allocation8], %s410_s27  ;;  %s1555_s5 = scalar_lea.vmem %s994_s10, 16 }
 0x6a6   : > { %p1556_p13 = scmp.ne.s32.totalorder %s994_s10, %s1555_s5  ;;  %s1703_s26 = smov [#allocation14]  }
 0x6a7   : > { %s1559_s21 = sshll.u32 %s1703_s26, 4  ;;  %s1560_s21 = int_to_ptr.vmem [resolvable:$false] %s1559_s21 }
 0x6a8   : > { %s1561_s1 = scalar_lea.vmem %s1560_s21, 32  ;;  %p1562_p5 = scmp.lt.s32.totalorder %s994_s10, %s1560_s21 }
 0x6a9   : > { %s1156_s23 = sshll.u32 %s2160_s25, 4  ;;  %p2164_p7 = scmp.ne.s32.totalorder %s2161_s11, 0 }
 0x6aa   : > { %s2163_s9 = smov %s2162_s17  ;;  %s2051_s22 = scalar_lea.hbm %s2162_s17, %s1156_s23 }
 0x6ab   : > { %p1557_p9 = pnand %p1556_p13, %p2164_p7  ;;  %p1563_p8 = scmp.lt.s32.totalorder %s1561_s1, %s1555_s5 }
 0x6ad   : > { %p1558_p11 = pneg %p1557_p9  ;;  %p1564_p12 = por %p1563_p8, %p1562_p5 }
 0x6af   : > { %p1565_p2 = pnand %p1564_p12, %p1558_p11 }
 0x6b1   : > { %1568 = shalt.err (!%p1565_p2)
}
 0x6b2   : > { %s1569_s27 = scalar_lea.hbm %s2051_s22, 16  ;;  %s1573_s25 = scalar_lea.hbm %s2163_s9, 32 }
 0x6b3   : > { %p1570_p6 = scmp.ne.s32.totalorder %s2051_s22, %s1569_s27  ;;  %p1574_p4 = scmp.lt.u32.totalorder %s2051_s22, %s2163_s9 }
 0x6b4   : > { %p1575_p1 = scmp.lt.u32.totalorder %s1573_s25, %s1569_s27  ;;  %p1577_p13 = scmp.lt.u32.totalorder %s1569_s27, %s2051_s22 }
 0x6b5   : > { %p1571_p10 = pnand %p1570_p6, %p2164_p7 }
 0x6b6   : > { %p1576_p3 = por %p1575_p1, %p1574_p4 }
 0x6b7   : > { %p1572_p0 = pneg %p1571_p10 }
 0x6b8   : > { %p1578_p9 = por %p1577_p13, %p1576_p3 }
 0x6ba   : > { %p1579_p11 = pnand %p1578_p9, %p1572_p0 }
 0x6bc   : > { %1582 = shalt.err (!%p1579_p11)
}
 0x6bd   : > { %1248 = dma.vmem_to_hbm [thread:$0]  (%p2164_p7), %s994_s10, 16, %s2051_s22, %s981_s4  }
 0x6be PF: > { %s2165_s3 = sld [smem:[#allocation19_spill]]  ;;  %s2166_s17 = sld [smem:[#allocation22_spill]] }
 0x6bf   : > { %p1275_p5 = scmp.ge.s32.totalorder %s1685_s20, 2 }
 0x6c4   : > { %s1005_s5 = sand.u32 1, %s2165_s3   ;;  %p2167_p8 = scmp.ne.s32.totalorder %s2166_s17, 0 }
 0x6c5   : > { %s1006_s26 = scalar_lea.sflag [#allocation8], %s1005_s5 }
 0x6c6   : > { %p1265_p12 = pnand %p1275_p5, %p2167_p8 }
 0x6c8   : > { %1640 = dma.done.wait (!%p1265_p12), %s1006_s26, 16  }
 0x6c9   : > { %1642 = vsyncadd (!%p1265_p12), %s1006_s26, 4294967280  ;;  %s29_s20 = sadd.s32 1, %s1685_s20   ;;  %s2168_s22 = smov %s1945_s14 }
 0x6ca   : > { %p26_p2 = scmp.ge.s32.totalorder %s29_s20, 8   ;;  %s2169_s11 = smov %s1649_s12 }
 0x6cb   : > { %s2170_s12 = smov %s1653_s13  ;;  %s2171_s13 = smov %s1942_s29 }
 0x6cc   : > { %s2172_s14 = smov %s1661_s15  ;;  %s2173_s15 = smov %s1665_s16 }
 0x6cd   : > { %s2174_s16 = smov %s2168_s22  ;;  %s2175_s4 = smov %s1677_s18 }
 0x6ce   : > { %s2176_s17 = smov %s1681_s19  ;;  %s2177_s18 = smov %s2180_s28 }
 0x6cf   : > { %s2178_s19 = smov %s2184_s30  ;;  %28 = sbr.rel (!%p26_p2) target bundleno = 18 (0x12), region = 121 }
 0x6d6   :  { %1010 = vsyncpa [#allocation7], 1 }
 0x6d7   :  { %1012 = vsyncpa [#allocation7 + $0x1], 1 }
 0x6d8   :  { %1013 = vsyncpa [#allocation10], 1 }
 0x6d9   :  { %1014 = vsyncpa [#allocation13], 1 }
 0x6da   :  { %1015 = vsyncpa [#allocation8], 1 }
 0x6db   :  { %1017 = vsyncpa [#allocation8 + $0x1], 1 }

</bundles_post_ra>
